<compile_context>
chip_gen: v7x
topology: tpu7x:2x2x1
jax: 0.10.0
libtpu: 0.0.40
codegen_flags: <defaults>
</compile_context>

<pallas_src>
import functools

import jax
import jax.numpy as jnp
from jax.experimental import pallas as pl
from jax.experimental.pallas import tpu as pltpu


def _focal_loss_kernel(logits_ref, labels_ref, out_ce_ref, out_w_ref,
                       acc_ce_ref, acc_w_ref, *, gamma, n, tile_n,
                       tiles_per_split, needs_mask):
    s = pl.program_id(0)          # parallel split (v7x megacore)
    t = pl.program_id(1)          # reduction step within the split

    @pl.when(t == 0)
    def _():
        acc_ce_ref[...] = jnp.zeros_like(acc_ce_ref)
        acc_w_ref[...] = jnp.zeros_like(acc_w_ref)

    x = logits_ref[...].astype(jnp.float32)        # (tile_n, C)
    labels = labels_ref[...]                       # (tile_n, 1) int32
    tn, c = x.shape

    # Numerically-stable log-sum-exp along the class (lane) axis.
    m = jnp.max(x, axis=1, keepdims=True)          # (tile_n, 1)
    ex = jnp.exp(x - m)                            # (tile_n, C)
    denom = jnp.sum(ex, axis=1, keepdims=True)     # (tile_n, 1)
    lse = m + jnp.log(denom)                       # (tile_n, 1)

    # Fused one-hot gather of the target logit: compare + select + reduce.
    col = jax.lax.broadcasted_iota(jnp.int32, (tn, c), 1)
    logit_t = jnp.sum(jnp.where(col == labels, x, 0.0), axis=1, keepdims=True)

    ce = lse - logit_t                             # per-row cross entropy
    p_t = jnp.exp(-ce)                             # softmax prob of target
    base = jnp.maximum(1.0 - p_t, 0.0)             # clamp: guard pow/NaN

    g = float(gamma)
    if g == float(int(g)) and 0 <= int(g) <= 8:
        # Integer gamma: cheap VPU multiplies (default gamma=2 -> one mul).
        w = jnp.ones_like(base)
        for _ in range(int(g)):
            w = w * base
    else:
        w = base ** g

    if needs_mask:
        # Mask only the (tile_n, 1) results — never the full (tile_n, C)
        # tile.  `where` selects, so NaN/garbage in padded rows is harmless.
        base_row = (s * tiles_per_split + t) * tile_n
        row = jax.lax.broadcasted_iota(jnp.int32, (tn, 1), 0) + base_row
        valid = row < n
        ce = jnp.where(valid, ce, 0.0)
        w = jnp.where(valid, w, 0.0)

    # Column accumulators: VPU adds only; the scalar reduce happens once at
    # the end of the split (shorter dep chain, better f32 accumulation).
    if acc_ce_ref.shape[0] == tn:
        acc_ce_ref[...] += ce
        acc_w_ref[...] += w
    else:
        acc_ce_ref[0:tn, :] += ce
        acc_w_ref[0:tn, :] += w

    @pl.when(t == pl.num_programs(1) - 1)
    def _():
        ce_sum = jnp.sum(acc_ce_ref[...])
        w_sum = jnp.sum(acc_w_ref[...])
        out_ce_ref[0] = jnp.zeros((8, 128), jnp.float32) + ce_sum
        out_w_ref[0] = jnp.zeros((8, 128), jnp.float32) + w_sum


def _choose_tile_n(n, c, in_itemsize, *, max_tile_rows=8192,
                   vmem_budget_bytes=20 * 1024 * 1024):
    """Rows per block, chosen by a VMEM working-set byte budget that counts
    the double-buffered input tiles, the lane-padded label blocks, the f32
    in-kernel temporaries and the column accumulators."""
    if in_itemsize >= 4:
        align = 8
    elif in_itemsize == 2:
        align = 16          # bf16 packs 16 rows per sublane group
    else:
        align = 32
    per_row = (2 * c * in_itemsize    # double-buffered logits tile
               + 2 * 128 * 4          # double-buffered (tile_n,1) int32 labels, lane-padded
               + 4 * c * 4            # ~4 f32 (tile_n, C) temporaries (x, ex, selects)
               + 2 * 128 * 4)         # two (tile_n, 1) f32 accumulators, lane-padded
    rows = vmem_budget_bytes // max(1, per_row)
    rows = max(align, (rows // align) * align)
    rows = min(rows, max_tile_rows)
    if n <= rows:
        return n                      # single block == full extent
    # Prefer a tile that divides n (removes all tail masking) if one exists
    # within ~25% of the byte target.
    lo = max(align, (int(rows * 0.75) // align) * align)
    cand = rows
    while cand >= lo:
        if n % cand == 0:
            return cand
        cand -= align
    return rows


def focal_loss(logits, labels, *, alpha=0.25, gamma=2.0, max_tile_rows=8192):
    """Pallas TPU implementation of FocalLoss.forward (alpha unused, as in
    the PyTorch module)."""
    n, c = logits.shape
    labels2d = labels.astype(jnp.int32).reshape(n, 1)
    in_itemsize = jnp.dtype(logits.dtype).itemsize

    tile_n = _choose_tile_n(n, c, in_itemsize, max_tile_rows=max_tile_rows)
    n_tiles = pl.cdiv(n, tile_n)

    # 2-way split across the leading "parallel" axis -> both v7x TensorCores.
    num_splits = 2 if n_tiles >= 2 else 1
    tiles_per_split = pl.cdiv(n_tiles, num_splits)
    coverage = num_splits * tiles_per_split * tile_n
    needs_mask = coverage != n

    last_block = n_tiles - 1
    if num_splits * tiles_per_split == n_tiles:
        def row_block(s, t):
            return (s * tiles_per_split + t, 0)
    else:
        # Odd tile count under the 2-way split: clamp the redundant block's
        # DMA to the last real block; the kernel masks all its rows.
        def row_block(s, t):
            return (jnp.minimum(s * tiles_per_split + t, last_block), 0)

    acc_rows = ((tile_n + 7) // 8) * 8

    # Explicit VMEM limit derived from the same working-set estimate
    # (floor 16 MiB so tiny shapes still get the compiler's usual headroom,
    # cap 32 MiB so it is safe on every generation including v7x).
    working = (2 * tile_n * c * in_itemsize + 2 * tile_n * 128 * 4
               + 4 * tile_n * c * 4 + 2 * acc_rows * 128 * 4)
    vmem_limit = max(16 << 20, min(int(working * 1.25) + (4 << 20), 32 << 20))

    out_ce, out_w = pl.pallas_call(
        functools.partial(_focal_loss_kernel, gamma=float(gamma), n=n,
                          tile_n=tile_n, tiles_per_split=tiles_per_split,
                          needs_mask=needs_mask),
        out_shape=(jax.ShapeDtypeStruct((num_splits, 8, 128), jnp.float32),
                   jax.ShapeDtypeStruct((num_splits, 8, 128), jnp.float32)),
        grid=(num_splits, tiles_per_split),
        in_specs=[
            pl.BlockSpec((tile_n, c), row_block),
            pl.BlockSpec((tile_n, 1), row_block),
        ],
        out_specs=(
            pl.BlockSpec((1, 8, 128), lambda s, t: (s, 0, 0)),
            pl.BlockSpec((1, 8, 128), lambda s, t: (s, 0, 0)),
        ),
        scratch_shapes=[
            pltpu.VMEM((acc_rows, 1), jnp.float32),   # running per-row sum(ce)
            pltpu.VMEM((acc_rows, 1), jnp.float32),   # running per-row sum((1-p_t)**gamma)
        ],
        compiler_params=pltpu.CompilerParams(
            dimension_semantics=("parallel", "arbitrary"),
            vmem_limit_bytes=vmem_limit),
    )(logits, labels2d)

    inv_n = 1.0 / float(n)
    ce_mean = jnp.sum(out_ce[:, 0, 0]) * inv_n
    w_mean = jnp.sum(out_w[:, 0, 0]) * inv_n
    # mean of the (N, N) broadcast loss factorizes exactly:
    return ce_mean * w_mean


def _focal_loss_ref(logits, labels, *, gamma=2.0):
    # Pure-JAX reference reproducing the PyTorch broadcasting behaviour.
    logits = logits.astype(jnp.float32)
    p = jax.nn.softmax(logits, axis=1)
    p_t = jnp.take_along_axis(p, labels[:, None], axis=1)            # (N, 1)
    logp = jax.nn.log_softmax(logits, axis=1)
    ce = -jnp.take_along_axis(logp, labels[:, None], axis=1)[:, 0]   # (N,)
    loss = ce[None, :] * (1.0 - p_t) ** gamma                        # (N, N)
    return jnp.mean(loss)


if __name__ == "__main__":
    key = jax.random.PRNGKey(0)
    k1, k2, k3, k4, k5, k6, k7, k8 = jax.random.split(key, 8)

    # 1) Small, single-block case (module-scale shapes).
    N, C = 8, 32
    logits = jax.random.normal(k1, (N, C), dtype=jnp.float32)
    labels = jax.random.randint(k2, (N,), 0, C, dtype=jnp.int32)
    out = jax.block_until_ready(focal_loss(logits, labels))
    ref = jax.block_until_ready(_focal_loss_ref(logits, labels))
    assert jnp.allclose(out, ref, rtol=1e-4, atol=1e-6), (out, ref)

    # 2) Multi-tile case with an odd tile count: exercises the grid, the
    #    2-way parallel split, the clamped redundant block and masking.
    N2, C2 = 520, 128
    logits2 = jax.random.normal(k3, (N2, C2), dtype=jnp.float32)
    labels2 = jax.random.randint(k4, (N2,), 0, C2, dtype=jnp.int32)
    out2 = jax.block_until_ready(focal_loss(logits2, labels2, max_tile_rows=128))
    ref2 = jax.block_until_ready(_focal_loss_ref(logits2, labels2))
    assert jnp.allclose(out2, ref2, rtol=1e-4, atol=1e-6), (out2, ref2)

    # 3) Partial last (real) block: N not a multiple of the tile.
    N3, C3 = 200, 64
    logits3 = jax.random.normal(k5, (N3, C3), dtype=jnp.float32)
    labels3 = jax.random.randint(k6, (N3,), 0, C3, dtype=jnp.int32)
    out3 = jax.block_until_ready(focal_loss(logits3, labels3, max_tile_rows=64))
    ref3 = jax.block_until_ready(_focal_loss_ref(logits3, labels3))
    assert jnp.allclose(out3, ref3, rtol=1e-4, atol=1e-6), (out3, ref3)

    # 4) bf16 logits: HBM traffic stays bf16; kernel upcasts in VMEM.
    N4, C4 = 256, 64
    logits4 = jax.random.normal(k7, (N4, C4), dtype=jnp.float32).astype(jnp.bfloat16)
    labels4 = jax.random.randint(k8, (N4,), 0, C4, dtype=jnp.int32)
    out4 = jax.block_until_ready(focal_loss(logits4, labels4, max_tile_rows=128))
    ref4 = jax.block_until_ready(_focal_loss_ref(logits4.astype(jnp.float32), labels4))
    assert jnp.allclose(out4, ref4, rtol=1e-4, atol=1e-6), (out4, ref4)

    print("KERNEL_OK")
</pallas_src>

<mosaic_0001>
module attributes {stable_mosaic.version = 11 : i64} {
  func.func @_focal_loss_kernel(%arg0: i32, %arg1: i32, %arg2: memref<8x32xf32, #tpu.memory_space<vmem>>, %arg3: memref<8x1xi32, #tpu.memory_space<vmem>>, %arg4: memref<1x8x128xf32, #tpu.memory_space<vmem>>, %arg5: memref<1x8x128xf32, #tpu.memory_space<vmem>>, %arg6: memref<8x1xf32, #tpu.memory_space<vmem>>, %arg7: memref<8x1xf32, #tpu.memory_space<vmem>>) attributes {dimension_semantics = [#tpu.dimension_semantics<parallel>, #tpu.dimension_semantics<arbitrary>], iteration_bounds = array<i64: 1, 1>, scalar_prefetch = 0 : i64, scratch_operands = 2 : i64, tpu.core_type = #tpu.core_type<tc>, window_params = [{transform_indices = @transform_0, window_bounds = array<i64: 8, 32>}, {transform_indices = @transform_1, window_bounds = array<i64: 8, 1>}, {transform_indices = @transform_2, window_bounds = array<i64: 1, 8, 128>}, {transform_indices = @transform_3, window_bounds = array<i64: 1, 8, 128>}]} {
    %c0_i32 = arith.constant 0 : i32
    %0 = arith.cmpi eq, %arg1, %c0_i32 : i32
    %1 = arith.extui %0 : i1 to i32
    %c0_i32_0 = arith.constant 0 : i32
    %2 = arith.cmpi ne, %1, %c0_i32_0 : i32
    scf.if %2 {
      %cst_21 = arith.constant 0.000000e+00 : f32
      %41 = vector.broadcast %cst_21 : f32 to vector<8x1xf32>
      %c0_22 = arith.constant 0 : index
      %c0_23 = arith.constant 0 : index
      %42 = vector.load %arg6[%c0_22, %c0_23] : memref<8x1xf32, #tpu.memory_space<vmem>>, vector<8x1xf32>
      tpu.vector_store %arg6[%c0_22, %c0_23], %41 {strides = array<i32>} : memref<8x1xf32, #tpu.memory_space<vmem>>, vector<8x1xf32>,
      %cst_24 = arith.constant 0.000000e+00 : f32
      %43 = vector.broadcast %cst_24 : f32 to vector<8x1xf32>
      %c0_25 = arith.constant 0 : index
      %c0_26 = arith.constant 0 : index
      %44 = vector.load %arg7[%c0_25, %c0_26] : memref<8x1xf32, #tpu.memory_space<vmem>>, vector<8x1xf32>
      tpu.vector_store %arg7[%c0_25, %c0_26], %43 {strides = array<i32>} : memref<8x1xf32, #tpu.memory_space<vmem>>, vector<8x1xf32>,
    } else {
    }
    %c0 = arith.constant 0 : index
    %c0_1 = arith.constant 0 : index
    %3 = vector.load %arg2[%c0, %c0_1] : memref<8x32xf32, #tpu.memory_space<vmem>>, vector<8x32xf32>
    %c0_2 = arith.constant 0 : index
    %c0_3 = arith.constant 0 : index
    %4 = vector.load %arg3[%c0_2, %c0_3] : memref<8x1xi32, #tpu.memory_space<vmem>>, vector<8x1xi32>
    %cst = arith.constant dense<0xFF800000> : vector<8xf32>
    %5 = vector.multi_reduction <maximumf>, %3, %cst [1] : vector<8x32xf32> to vector<8xf32>
    %6 = vector.shape_cast %5 : vector<8xf32> to vector<8x1xf32>
    %7 = vector.broadcast %6 : vector<8x1xf32> to vector<8x32xf32>
    %8 = arith.subf %3, %7 : vector<8x32xf32>
    %9 = math.exp %8 : vector<8x32xf32>
    %cst_4 = arith.constant dense<0.000000e+00> : vector<8xf32>
    %10 = vector.multi_reduction <add>, %9, %cst_4 [1] : vector<8x32xf32> to vector<8xf32>
    %11 = vector.shape_cast %10 : vector<8xf32> to vector<8x1xf32>
    %12 = math.log %11 : vector<8x1xf32>
    %13 = arith.addf %6, %12 : vector<8x1xf32>
    %14 = tpu.iota {dimensions = array<i32: 1>} : vector<8x32xi32>
    %15 = vector.broadcast %4 : vector<8x1xi32> to vector<8x32xi32>
    %16 = arith.cmpi eq, %14, %15 : vector<8x32xi32>
    %cst_5 = arith.constant 0.000000e+00 : f32
    %17 = vector.broadcast %cst_5 : f32 to vector<8x32xf32>
    %18 = arith.select %16, %3, %17 : vector<8x32xi1>, vector<8x32xf32>
    %cst_6 = arith.constant dense<0.000000e+00> : vector<8xf32>
    %19 = vector.multi_reduction <add>, %18, %cst_6 [1] : vector<8x32xf32> to vector<8xf32>
    %20 = vector.shape_cast %19 : vector<8xf32> to vector<8x1xf32>
    %21 = arith.subf %13, %20 : vector<8x1xf32>
    %cst_7 = arith.constant 0.000000e+00 : f32
    %22 = vector.broadcast %cst_7 : f32 to vector<8x1xf32>
    %23 = arith.subf %22, %21 : vector<8x1xf32>
    %24 = math.exp %23 : vector<8x1xf32>
    %cst_8 = arith.constant 1.000000e+00 : f32
    %25 = vector.broadcast %cst_8 : f32 to vector<8x1xf32>
    %26 = arith.subf %25, %24 : vector<8x1xf32>
    %cst_9 = arith.constant 0.000000e+00 : f32
    %27 = vector.broadcast %cst_9 : f32 to vector<8x1xf32>
    %28 = arith.maximumf %26, %27 : vector<8x1xf32>
    %cst_10 = arith.constant 1.000000e+00 : f32
    %29 = vector.broadcast %cst_10 : f32 to vector<8x1xf32>
    %30 = arith.mulf %29, %28 : vector<8x1xf32>
    %31 = arith.mulf %30, %28 : vector<8x1xf32>
    %c0_11 = arith.constant 0 : index
    %c0_12 = arith.constant 0 : index
    %32 = vector.load %arg6[%c0_11, %c0_12] : memref<8x1xf32, #tpu.memory_space<vmem>>, vector<8x1xf32>
    %33 = arith.addf %32, %21 : vector<8x1xf32>
    %c0_13 = arith.constant 0 : index
    %c0_14 = arith.constant 0 : index
    %34 = vector.load %arg6[%c0_13, %c0_14] : memref<8x1xf32, #tpu.memory_space<vmem>>, vector<8x1xf32>
    tpu.vector_store %arg6[%c0_13, %c0_14], %33 {strides = array<i32>} : memref<8x1xf32, #tpu.memory_space<vmem>>, vector<8x1xf32>,
    %c0_15 = arith.constant 0 : index
    %c0_16 = arith.constant 0 : index
    %35 = vector.load %arg7[%c0_15, %c0_16] : memref<8x1xf32, #tpu.memory_space<vmem>>, vector<8x1xf32>
    %36 = arith.addf %35, %31 : vector<8x1xf32>
    %c0_17 = arith.constant 0 : index
    %c0_18 = arith.constant 0 : index
    %37 = vector.load %arg7[%c0_17, %c0_18] : memref<8x1xf32, #tpu.memory_space<vmem>>, vector<8x1xf32>
    tpu.vector_store %arg7[%c0_17, %c0_18], %36 {strides = array<i32>} : memref<8x1xf32, #tpu.memory_space<vmem>>, vector<8x1xf32>,
    %c0_i32_19 = arith.constant 0 : i32
    %38 = arith.cmpi eq, %arg1, %c0_i32_19 : i32
    %39 = arith.extui %38 : i1 to i32
    %c0_i32_20 = arith.constant 0 : i32
    %40 = arith.cmpi ne, %39, %c0_i32_20 : i32
    scf.if %40 {
      %c0_21 = arith.constant 0 : index
      %c0_22 = arith.constant 0 : index
      %41 = vector.load %arg6[%c0_21, %c0_22] : memref<8x1xf32, #tpu.memory_space<vmem>>, vector<8x1xf32>
      %42 = vector.shape_cast %41 : vector<8x1xf32> to vector<1x8x1xf32>
      %cst_23 = arith.constant dense<0.000000e+00> : vector<1xf32>
      %43 = vector.multi_reduction <add>, %42, %cst_23 [1, 2] : vector<1x8x1xf32> to vector<1xf32>
      %44 = vector.shape_cast %43 : vector<1xf32> to vector<1x1x1xf32>
      %45 = vector.extract %44[0, 0, 0] : f32 from vector<1x1x1xf32>
      %c0_24 = arith.constant 0 : index
      %c0_25 = arith.constant 0 : index
      %46 = vector.load %arg7[%c0_24, %c0_25] : memref<8x1xf32, #tpu.memory_space<vmem>>, vector<8x1xf32>
      %47 = vector.shape_cast %46 : vector<8x1xf32> to vector<1x8x1xf32>
      %cst_26 = arith.constant dense<0.000000e+00> : vector<1xf32>
      %48 = vector.multi_reduction <add>, %47, %cst_26 [1, 2] : vector<1x8x1xf32> to vector<1xf32>
      %49 = vector.shape_cast %48 : vector<1xf32> to vector<1x1x1xf32>
      %50 = vector.extract %49[0, 0, 0] : f32 from vector<1x1x1xf32>
      %cst_27 = arith.constant 0.000000e+00 : f32
      %51 = vector.broadcast %cst_27 : f32 to vector<8x128xf32>
      %52 = vector.broadcast %45 : f32 to vector<8x128xf32>
      %53 = arith.addf %51, %52 : vector<8x128xf32>
      %c0_28 = arith.constant 0 : index
      %c0_29 = arith.constant 0 : index
      %c0_30 = arith.constant 0 : index
      %54 = vector.load %arg4[%c0_28, %c0_29, %c0_30] : memref<1x8x128xf32, #tpu.memory_space<vmem>>, vector<1x8x128xf32>
      %55 = vector.shape_cast %54 : vector<1x8x128xf32> to vector<8x128xf32>
      %56 = vector.shape_cast %53 : vector<8x128xf32> to vector<1x8x128xf32>
      tpu.vector_store %arg4[%c0_28, %c0_29, %c0_30], %56 {strides = array<i32>} : memref<1x8x128xf32, #tpu.memory_space<vmem>>, vector<1x8x128xf32>,
      %cst_31 = arith.constant 0.000000e+00 : f32
      %57 = vector.broadcast %cst_31 : f32 to vector<8x128xf32>
      %58 = vector.broadcast %50 : f32 to vector<8x128xf32>
      %59 = arith.addf %57, %58 : vector<8x128xf32>
      %c0_32 = arith.constant 0 : index
      %c0_33 = arith.constant 0 : index
      %c0_34 = arith.constant 0 : index
      %60 = vector.load %arg5[%c0_32, %c0_33, %c0_34] : memref<1x8x128xf32, #tpu.memory_space<vmem>>, vector<1x8x128xf32>
      %61 = vector.shape_cast %60 : vector<1x8x128xf32> to vector<8x128xf32>
      %62 = vector.shape_cast %59 : vector<8x128xf32> to vector<1x8x128xf32>
      tpu.vector_store %arg5[%c0_32, %c0_33, %c0_34], %62 {strides = array<i32>} : memref<1x8x128xf32, #tpu.memory_space<vmem>>, vector<1x8x128xf32>,
    } else {
    }
    return
  }
  func.func @transform_0(%arg0: i32, %arg1: i32) -> (i32, i32) {
    %c1_i32 = arith.constant 1 : i32
    %0 = arith.muli %arg0, %c1_i32 : i32
    %1 = arith.addi %0, %arg1 : i32
    %c0_i32 = arith.constant 0 : i32
    %c0_i32_0 = arith.constant 0 : i32
    return %1, %c0_i32 : i32, i32
  }
  func.func @transform_1(%arg0: i32, %arg1: i32) -> (i32, i32) {
    %c1_i32 = arith.constant 1 : i32
    %0 = arith.muli %arg0, %c1_i32 : i32
    %1 = arith.addi %0, %arg1 : i32
    %c0_i32 = arith.constant 0 : i32
    %c0_i32_0 = arith.constant 0 : i32
    return %1, %c0_i32 : i32, i32
  }
  func.func @transform_2(%arg0: i32, %arg1: i32) -> (i32, i32, i32) {
    %c0_i32 = arith.constant 0 : i32
    %c0_i32_0 = arith.constant 0 : i32
    %c0_i32_1 = arith.constant 0 : i32
    return %arg0, %c0_i32, %c0_i32_0 : i32, i32, i32
  }
  func.func @transform_3(%arg0: i32, %arg1: i32) -> (i32, i32, i32) {
    %c0_i32 = arith.constant 0 : i32
    %c0_i32_0 = arith.constant 0 : i32
    %c0_i32_1 = arith.constant 0 : i32
    return %arg0, %c0_i32, %c0_i32_0 : i32, i32, i32
  }
}

</mosaic_0001>

<bundles_post_ra>
// kernel: tpu_custom_call.1
= control target key start
LH: loop header
LB: loop body
LE: loop exit
PB: predicated region body
PF: predicated region fallthrough
CT: control target
= control target key end

     0   :  { %9 = vsyncpa [#allocation5], 0  ;;  %vm58_vm0 = vcmask 261120   ;;  %s292_s0 = inlined_call_operand.vmem [shape: f32[8,32], index: 0, kind: input, shape index: {}]   ;;  %s293_s1 = inlined_call_operand.vmem [shape: s32[8,1], index: 1, kind: input, shape index: {}]   ;;  %s294_s2 = inlined_call_operand.hbm [shape: f32[1,8,128], index: 2, kind: output, shape index: {0}]   ;;  %s295_s3 = inlined_call_operand.hbm [shape: f32[1,8,128], index: 3, kind: output, shape index: {1}]  }
   0x1   :  { %v56_v0 = vld [vmem:[%s292_s0] sm:$0xff] }
   0x2   :  { %10 = vsyncpa [#allocation7], 0  ;;  %v59_v1 = vsel %vm58_vm0, %v56_v0, -inf  ;;  %v229_v2 = vmov 0   ;;  %v57_v3 = vld [vmem:[%s293_s1] sm:$0xff]  ;;  %v71_v7 = vlaneseq  ;;  %vm53_vm2 = vcmask 7168  }
   0x3   :  { %174 = vset.pattern.permute.xlu0 %v229_v2  ;;  %v230_v14 = vmov 0.0   ;;  %s231_s0 = smov [#allocation4]  }
   0x4   :  { %60 = vmax.xlane.f32.xlu0 %v59_v1  ;;  %v72_v8 = vand.u32 127, %v71_v7  ;;  %54 = vst.msk [vmem:[#allocation2] sm:$0xff] %vm53_vm2, %v230_v14  ;;  %55 = vst.msk [vmem:[#allocation3] sm:$0xff] %vm53_vm2, %v230_v14  ;;  %s132_s1 = sshll.u32 %s231_s0, 4  ;;  %s133_s1 = int_to_ptr.vmem [resolvable:$true] %s132_s1 }
   0x5   :  { %s181_s17 = scalar_lea.vmem %s133_s1, 128  ;;  %p186_p1 = scmp.lt.s32.totalorder %s133_s1, %s133_s1 }
   0x6   :  { %p182_p0 = scmp.ne.s32.totalorder %s133_s1, %s181_s17  ;;  %p187_p2 = scmp.lt.s32.totalorder %s181_s17, %s181_s17 }
   0x8   :  { %p188_p3 = por %p187_p2, %p186_p1 }
   0xa   :  { %p189_p4 = pnand %p188_p3, %p182_p0 }
   0xb   :  { %v88_v20 = vld [vmem:[#allocation2] sm:$0xff]  ;;  %v92_v30 = vld [vmem:[#allocation3] sm:$0xff] }
  0x1a   :  { %74 = vperm.xlu0 %174, %v57_v3  }
  0x91   :  { %v61_v4 = vpop.xlane.xlu0 %60 }
  0x92   :  { %v62_v5 = vsub.f32 %v56_v0, %v61_v4 }
  0x94   :  { %v63_v6 = vmul.f32 1.442695, %v62_v5 }
  0x96   :  { %175 = vpow2.f32 %v63_v6 }
  0x99   :  { %v75_v9 = vpop.permute.xlu0 %74 }
  0x9a   :  { %vm76_vm1 = vcmp.eq.s32.totalorder %v72_v8, %v75_v9 }
  0x9b   :  { %v77_v11 = vsel %vm76_vm1, %v56_v0, 0.0 }
  0x9c   :  { %v78_v13 = vsel %vm58_vm0, %v77_v11, 0.0 }
  0xa0   :  { %v176_v10 = vpop.eup %175 }
  0xa1   :  { %v65_v12 = vsel %vm58_vm0, %v176_v10, 0.0 }
  0xa2   :  { %66 = vadd.xlane.f32.xlu1 %v65_v12 }
  0xa6   :  { %79 = vadd.xlane.f32.xlu1 %v78_v13 }
 0x12f   :  { %v67_v15 = vpop.xlane.xlu1 %66 }
 0x130   :  { %177 = vlog2.f32 %v67_v15 }
 0x133   :  { %v80_v18 = vpop.xlane.xlu1 %79 }
 0x13a   :  { %v178_v16 = vpop.eup %177 }
 0x13b   :  { %v69_v17 = vmul.f32 0.6931472, %v178_v16 }
 0x13d   :  { %v70_v19 = vadd.f32 %v69_v17, %v61_v4 }
 0x13f   :  { %v81_v21 = vsub.f32 %v70_v19, %v80_v18 }
 0x141   :  { %v82_v22 = vsub.f32 0.0, %v81_v21  ;;  %v89_v23 = vadd.f32 %v88_v20, %v81_v21 }
 0x143   :  { %v83_v24 = vmul.f32 1.442695, %v82_v22  ;;  %91 = vst.msk [vmem:[#allocation2] sm:$0xff] %vm53_vm2, %v89_v23 }
 0x145   :  { %179 = vpow2.f32 %v83_v24 }
 0x14a   :  { %v98_v25 = vld [vmem:[#allocation2] sm:$0xff] }
 0x14b   :  { %v99_v26 = vsel %vm53_vm2, %v98_v25, 0.0 }
 0x14c   :  { %100 = vadd.xlane.f32.xlu1 %v99_v26 }
 0x14f   :  { %v180_v27 = vpop.eup %179 }
 0x150   :  { %v85_v28 = vsub.f32 1.0, %v180_v27 }
 0x152   :  { %v86_v29 = vmax.f32 %v85_v28, 0.0 }
 0x154   :  { %v87_v31 = vmul.f32 %v86_v29, %v86_v29 }
 0x156   :  { %v93_v32 = vadd.f32 %v92_v30, %v87_v31 }
 0x158   :  { %94 = vst.msk [vmem:[#allocation3] sm:$0xff] %vm53_vm2, %v93_v32 }
 0x15f   :  { %v109_v33 = vld [vmem:[#allocation3] sm:$0xff] }
 0x160   :  { %v110_v34 = vsel %vm53_vm2, %v109_v33, 0.0 }
 0x161   :  { %111 = vadd.xlane.f32.xlu1 %v110_v34 }
 0x1d9   :  { %v101_v35 = vpop.xlane.xlu1 %100 }
 0x1da   :  { %v102_v36 = vrot.slane %v101_v35, 4 }
 0x1dc   :  { %v103_v37 = vadd.f32 %v102_v36, %v101_v35 }
 0x1de   :  { %v104_v38 = vrot.slane %v103_v37, 2 }
 0x1e0   :  { %v105_v39 = vadd.f32 %v104_v38, %v103_v37 }
 0x1e2   :  { %v106_v40 = vrot.slane %v105_v39, 1 }
 0x1e4   :  { %v107_v41 = vadd.f32 %v106_v40, %v105_v39 }
 0x1e6   :  { %166 = vpush %v107_v41 }
 0x1ee   :  { %v112_v42 = vpop.xlane.xlu1 %111 }
 0x1ef   :  { %v113_v43 = vrot.slane %v112_v42, 4 }
 0x1f1   :  { %v114_v44 = vadd.f32 %v113_v43, %v112_v42 }
 0x1f3   :  { %v115_v45 = vrot.slane %v114_v44, 2 }
 0x1f5   :  { %v116_v46 = vadd.f32 %v115_v45, %v114_v44 }
 0x1f7   :  { %v117_v47 = vrot.slane %v116_v46, 1 }
 0x1f9   :  { %v118_v48 = vadd.f32 %v117_v47, %v116_v46 }
 0x1fb   :  { %168 = vpush %v118_v48 }
 0x217   :  { %s167_s16 = spop %166 }
 0x218   :  { %v120_v49 = vstv %s167_s16 }
 0x219   :  { %122 = vst [vmem:[#allocation4] sm:$0xff] %v120_v49 }
 0x21a   :  { %192 = shalt.err (!%p189_p4)
}
 0x21b   :  { %s193_s20 = scalar_lea.hbm %s294_s2, 128 }
 0x21c   :  { %p194_p5 = scmp.ne.s32.totalorder %s294_s2, %s193_s20  ;;  %p197_p6 = scmp.lt.u32.totalorder %s193_s20, %s294_s2 }
 0x21e   :  { %p199_p7 = pnand %p197_p6, %p194_p5 }
 0x220   :  { %202 = shalt.err (!%p199_p7)
}
 0x221   :  { %135 = dma.vmem_to_hbm [thread:$0]  %s133_s1, 128, %s294_s2, [#allocation5]  }
 0x222   :  { %s232_s27 = smov [#allocation6]  }
 0x223   :  { %s142_s28 = sshll.u32 %s232_s27, 4  ;;  %s143_s28 = int_to_ptr.vmem [resolvable:$true] %s142_s28 }
 0x224   :  { %s203_s30 = scalar_lea.vmem %s143_s28, 128  ;;  %p208_p9 = scmp.lt.s32.totalorder %s143_s28, %s143_s28 }
 0x225   :  { %p204_p8 = scmp.ne.s32.totalorder %s143_s28, %s203_s30  ;;  %p209_p10 = scmp.lt.s32.totalorder %s203_s30, %s203_s30 }
 0x227   :  { %p210_p11 = por %p209_p10, %p208_p9 }
 0x229   :  { %p211_p12 = pnand %p210_p11, %p204_p8 }
 0x22c   :  { %s169_s29 = spop %168 }
 0x22d   :  { %v123_v50 = vstv %s169_s29 }
 0x22e   :  { %125 = vst [vmem:[#allocation6] sm:$0xff] %v123_v50 }
 0x22f   :  { %214 = shalt.err (!%p211_p12)
}
 0x230   :  { %s215_s6 = scalar_lea.hbm %s295_s3, 128 }
 0x231   :  { %p216_p13 = scmp.ne.s32.totalorder %s295_s3, %s215_s6  ;;  %p219_p0 = scmp.lt.u32.totalorder %s215_s6, %s295_s3 }
 0x233   :  { %p221_p1 = pnand %p219_p0, %p216_p13 }
 0x235   :  { %224 = shalt.err (!%p221_p1)
}
 0x236   :  { %145 = dma.vmem_to_hbm [thread:$0]  %s143_s28, 128, %s295_s3, [#allocation7]  }
 0x237   :  { %225 = dma.done.wait [#allocation5], 128  }
 0x238   :  { %226 = vsyncadd [#allocation5], 4294967168 }
 0x239   :  { %227 = dma.done.wait [#allocation7], 128  }
 0x23a   :  { %228 = vsyncadd [#allocation7], 4294967168 }
 0x23b   :  { %152 = vsyncpa [#allocation5], 1 }
 0x23c   :  { %153 = vsyncpa [#allocation7], 1 }

</bundles_post_ra>
